<compile_context>
chip_gen: v5e
topology: v5e:2x2
jax: 0.10.0
libtpu: 0.0.40
codegen_flags: <defaults>
</compile_context>

<pallas_src>
import jax
import jax.numpy as jnp
import numpy as np
from jax.experimental import pallas as pl
from jax.experimental.pallas import tpu as pltpu


def _round_up(v, m):
    return ((v + m - 1) // m) * m


def _cdiv(a, b):
    return -(-a // b)


def _vmem_budget_bytes():
    """Generation-aware VMEM budget (75% of physical, conservative fallback)."""
    try:
        cap = int(pltpu.get_tpu_info().vmem_capacity_bytes)
    except Exception:
        cap = 64 << 20  # safe lower bound (v7x per-TC VMEM)
    return (cap * 3) // 4


# --------------------------------------------------------------------------
# Kernel 1: depthwise 7x7 (valid) + folded bn1 + 1x1 conv + folded bn2 scale
# Produces the (Np, Ep) embedding z in f32.
# --------------------------------------------------------------------------
def embed_kernel(x_ref, wdw_ref, wc_ref, z_ref):
    # x arrives bf16 (halves HBM traffic); upcast to f32 for the VPU
    # multiply-reduce (v5e has no bf16 VPU).  bn1 scale is folded into wdw.
    xf = x_ref[...].astype(jnp.float32)                       # (tn, HWp, Cp)
    y = jnp.sum(xf * wdw_ref[...], axis=1)                    # (tn, Cp) f32
    # 1x1 pointwise conv (bn2 scale folded into wc columns) on the MXU.
    z_ref[...] = jnp.dot(y.astype(wc_ref.dtype), wc_ref[...],
                         preferred_element_type=jnp.float32)  # (tn, Ep) f32


# --------------------------------------------------------------------------
# Kernel 2: Linear head.  z is resident (constant-index full block); the
# Linear weight is streamed exactly once in lane-dense class tiles.
# --------------------------------------------------------------------------
def linear_kernel(z_ref, wl_ref, bl_ref, out_ref):
    out_ref[...] = (jnp.dot(z_ref[...].astype(wl_ref.dtype), wl_ref[...],
                            preferred_element_type=jnp.float32)
                    + bl_ref[...])


def modified_gdc_forward(x, params, *, weight_dtype=jnp.bfloat16):
    """x: (N, C, 7, 7) float32, NCHW. Returns (N, num_classes) float32."""
    N, C, H, W = x.shape
    HW = H * W
    E = params["conv_w"].shape[0]
    K = params["linear_w"].shape[0]
    eps = 1e-5

    # ---- constant-fold the BatchNorms (eval mode, running stats) ----
    inv1 = params["bn1_gamma"] / jnp.sqrt(params["bn1_var"] + eps)       # (C,)
    sh1 = params["bn1_beta"] - params["bn1_mean"] * inv1                 # (C,)
    inv2 = params["bn2_gamma"] / jnp.sqrt(params["bn2_var"] + eps)       # (E,)
    sh2 = params["bn2_beta"] - params["bn2_mean"] * inv2                 # (E,)

    wdw = params["conv_dw_w"].reshape(C, HW).T * inv1[None, :]           # (HW, C)
    wc_t = params["conv_w"].reshape(E, C).T                              # (C, E)
    wc_f = wc_t * inv2[None, :]                                          # bn2 scale folded
    wl_t = params["linear_w"].T                                          # (E, K)
    b2_eff = (sh1 @ wc_t) * inv2 + sh2                                   # (E,)
    bl_eff = params["linear_b"] + b2_eff @ wl_t                          # (K,)

    # ---- pad to TPU-friendly shapes ----
    Cp = _round_up(C, 128)
    HWp = _round_up(HW, 8)
    Ep = _round_up(E, 128)
    Kp0 = _round_up(K, 128)

    budget = _vmem_budget_bytes()
    wdt = weight_dtype

    # Batch tile for the embedding kernel, sized from the VMEM budget
    # (x tile is bf16 and double-buffered; wdw/wc are constant-index).
    fixed1 = 2 * (HWp * Cp * 4) + 2 * (Cp * Ep * 2)
    per_row = 2 * (HWp * Cp * 2) + 2 * (Ep * 4)
    tn = max(8, ((budget - fixed1) // per_row) // 8 * 8)
    tn = min(tn, 512)                       # keep per-step DMA reasonable
    tn = min(tn, _round_up(N, 8))
    if N >= 16:                             # >=2 batch tiles for v7x's 2 TCs
        tn = min(tn, _round_up(_cdiv(N, 2), 8))
    Np = _round_up(N, tn)

    # Class tile for the Linear GEMM: balanced, 256-aligned (MXU is 2x256^2 on
    # v6e/v7x), capped by the VMEM budget with z_all held resident.
    fixed2 = 2 * (Np * Ep * 4)
    per_col = 2 * (Ep * 2) + 2 * (Np * 4) + 2 * 4
    tk_max = max(128, ((budget - fixed2) // per_col) // 128 * 128)
    tk_target = max(128, min(tk_max, 2048, Kp0))
    n_k = _cdiv(Kp0, tk_target)
    tk_each = _cdiv(Kp0, n_k)
    tk = 128 if tk_each <= 128 else _round_up(tk_each, 256)
    Kp = n_k * tk

    # ---- padded operands ----
    x_nhwc = jnp.transpose(x.reshape(N, C, HW), (0, 2, 1))               # (N, HW, C)
    x_p = (jnp.zeros((Np, HWp, Cp), jnp.bfloat16)
           .at[:N, :HW, :C].set(x_nhwc.astype(jnp.bfloat16)))
    wdw_p = jnp.zeros((HWp, Cp), jnp.float32).at[:HW, :C].set(wdw)
    wc_p = jnp.zeros((Cp, Ep), wdt).at[:C, :E].set(wc_f.astype(wdt))
    wl_p = jnp.zeros((Ep, Kp), wdt).at[:E, :K].set(wl_t.astype(wdt))
    bl_p = jnp.zeros((1, Kp), jnp.float32).at[0, :K].set(bl_eff)

    # ---- pass 1: embedding (z) for the whole padded batch ----
    z_all = pl.pallas_call(
        embed_kernel,
        out_shape=jax.ShapeDtypeStruct((Np, Ep), jnp.float32),
        grid_spec=pltpu.PrefetchScalarGridSpec(
            num_scalar_prefetch=0,
            grid=(Np // tn,),
            in_specs=[
                pl.BlockSpec((tn, HWp, Cp), lambda i: (i, 0, 0)),  # x (bf16)
                pl.BlockSpec((HWp, Cp), lambda i: (0, 0)),         # dw weights
                pl.BlockSpec((Cp, Ep), lambda i: (0, 0)),          # 1x1 conv
            ],
            out_specs=pl.BlockSpec((tn, Ep), lambda i: (i, 0)),
        ),
        compiler_params=pltpu.CompilerParams(
            dimension_semantics=("parallel",),
            vmem_limit_bytes=budget,
        ),
    )(x_p, wdw_p, wc_p)

    # ---- pass 2: Linear head; wl streamed through HBM exactly once ----
    # TODO(synk): for very large num_classes, emit bf16 logits (or fuse the
    # downstream normalization) to halve the output writeback stream.
    out = pl.pallas_call(
        linear_kernel,
        out_shape=jax.ShapeDtypeStruct((Np, Kp), jnp.float32),
        grid_spec=pltpu.PrefetchScalarGridSpec(
            num_scalar_prefetch=0,
            grid=(Kp // tk,),
            in_specs=[
                pl.BlockSpec((Np, Ep), lambda j: (0, 0)),          # z resident
                pl.BlockSpec((Ep, tk), lambda j: (0, j)),          # Linear W tile
                pl.BlockSpec((1, tk), lambda j: (0, j)),           # folded bias
            ],
            out_specs=pl.BlockSpec((Np, tk), lambda j: (0, j)),
        ),
        compiler_params=pltpu.CompilerParams(
            dimension_semantics=("parallel",),
            vmem_limit_bytes=budget,
        ),
    )(z_all, wl_p, bl_p)

    return out[:N, :K]


def reference_forward(x, params):
    """Pure-JAX eval-mode f32 reference mirroring the PyTorch ModifiedGDC."""
    N, C, H, W = x.shape
    eps = 1e-5
    y = jnp.einsum("nchw,chw->nc", x, params["conv_dw_w"].reshape(C, H, W))
    y = ((y - params["bn1_mean"]) / jnp.sqrt(params["bn1_var"] + eps)
         * params["bn1_gamma"] + params["bn1_beta"])
    # dropout: identity (eval)
    E = params["conv_w"].shape[0]
    z = y @ params["conv_w"].reshape(E, C).T
    z = ((z - params["bn2_mean"]) / jnp.sqrt(params["bn2_var"] + eps)
         * params["bn2_gamma"] + params["bn2_beta"])
    return z @ params["linear_w"].T + params["linear_b"]


def make_params(key, in_chs, emb, num_classes):
    ks = jax.random.split(key, 6)
    return {
        "conv_dw_w": 0.1 * jax.random.normal(ks[0], (in_chs, 1, 7, 7), jnp.float32),
        "bn1_gamma": 1.0 + 0.05 * jax.random.normal(ks[1], (in_chs,), jnp.float32),
        "bn1_beta": 0.02 * jnp.arange(in_chs, dtype=jnp.float32),
        "bn1_mean": 0.01 * jnp.arange(in_chs, dtype=jnp.float32),
        "bn1_var": jnp.ones((in_chs,), jnp.float32) * 0.9,
        "conv_w": 0.1 * jax.random.normal(ks[2], (emb, in_chs, 1, 1), jnp.float32),
        "bn2_gamma": 1.0 + 0.05 * jax.random.normal(ks[3], (emb,), jnp.float32),
        "bn2_beta": 0.01 * jnp.arange(emb, dtype=jnp.float32),
        "bn2_mean": 0.005 * jnp.arange(emb, dtype=jnp.float32),
        "bn2_var": jnp.ones((emb,), jnp.float32) * 1.1,
        "linear_w": 0.1 * jax.random.normal(ks[4], (num_classes, emb), jnp.float32),
        "linear_b": 0.01 * jax.random.normal(ks[5], (num_classes,), jnp.float32),
    }


if __name__ == "__main__":
    # Small shapes consistent with the module: the view(N, -1) + BatchNorm1d(emb)
    # requires the post-conv_dw spatial extent to be 1x1, i.e. a 7x7 feature map.
    N, C, H, W = 2, 4, 7, 7
    emb, num_classes = 32, 8

    key = jax.random.PRNGKey(0)
    kx, kp = jax.random.split(key)
    x = jax.random.normal(kx, (N, C, H, W), jnp.float32)
    params = make_params(kp, C, emb, num_classes)

    out = modified_gdc_forward(x, params)
    out = jax.block_until_ready(out)

    ref = reference_forward(x, params)
    # bf16 input/weight streams with f32 accumulation -> loosened tolerance.
    np.testing.assert_allclose(np.asarray(out), np.asarray(ref),
                               rtol=2e-2, atol=2e-2)
    print("KERNEL_OK")
</pallas_src>

<mosaic_0001>
module attributes {stable_mosaic.version = 11 : i64} {
  func.func @embed_kernel(%arg0: i32, %arg1: memref<8x56x128xbf16, #tpu.memory_space<vmem>>, %arg2: memref<56x128xf32, #tpu.memory_space<vmem>>, %arg3: memref<128x128xbf16, #tpu.memory_space<vmem>>, %arg4: memref<8x128xf32, #tpu.memory_space<vmem>>) attributes {dimension_semantics = [#tpu.dimension_semantics<parallel>], iteration_bounds = array<i64: 1>, scalar_prefetch = 0 : i64, scratch_operands = 0 : i64, tpu.core_type = #tpu.core_type<tc>, window_params = [{transform_indices = @transform_0, window_bounds = array<i64: 8, 56, 128>}, {pipeline_mode = #tpu.pipeline_mode<synchronous>, transform_indices = @transform_1, window_bounds = array<i64: 56, 128>}, {pipeline_mode = #tpu.pipeline_mode<synchronous>, transform_indices = @transform_2, window_bounds = array<i64: 128, 128>}, {transform_indices = @transform_3, window_bounds = array<i64: 8, 128>}]} {
    %c0 = arith.constant 0 : index
    %c0_0 = arith.constant 0 : index
    %c0_1 = arith.constant 0 : index
    %0 = vector.load %arg1[%c0, %c0_0, %c0_1] : memref<8x56x128xbf16, #tpu.memory_space<vmem>>, vector<8x56x128xbf16>
    %1 = arith.extf %0 : vector<8x56x128xbf16> to vector<8x56x128xf32>
    %c0_2 = arith.constant 0 : index
    %c0_3 = arith.constant 0 : index
    %2 = vector.load %arg2[%c0_2, %c0_3] : memref<56x128xf32, #tpu.memory_space<vmem>>, vector<56x128xf32>
    %3 = vector.shape_cast %2 : vector<56x128xf32> to vector<1x56x128xf32>
    %4 = vector.broadcast %3 : vector<1x56x128xf32> to vector<8x56x128xf32>
    %5 = arith.mulf %1, %4 : vector<8x56x128xf32>
    %cst = arith.constant dense<0.000000e+00> : vector<8x128xf32>
    %6 = vector.multi_reduction <add>, %5, %cst [1] : vector<8x56x128xf32> to vector<8x128xf32>
    %7 = arith.truncf %6 : vector<8x128xf32> to vector<8x128xbf16>
    %c0_4 = arith.constant 0 : index
    %c0_5 = arith.constant 0 : index
    %8 = vector.load %arg3[%c0_4, %c0_5] : memref<128x128xbf16, #tpu.memory_space<vmem>>, vector<128x128xbf16>
    %cst_6 = arith.constant dense<0.000000e+00> : vector<8x128xf32>
    %9 = tpu.matmul %7, %8, %cst_6 {dimension_numbers = #tpu.dot_dimension_numbers<[1], [0], [0], [1], [0, 0, 1, 1], [], []>} : vector<8x128xbf16>, vector<128x128xbf16>, vector<8x128xf32> -> vector<8x128xf32>
    %c0_7 = arith.constant 0 : index
    %c0_8 = arith.constant 0 : index
    %10 = vector.load %arg4[%c0_7, %c0_8] : memref<8x128xf32, #tpu.memory_space<vmem>>, vector<8x128xf32>
    tpu.vector_store %arg4[%c0_7, %c0_8], %9 {strides = array<i32>} : memref<8x128xf32, #tpu.memory_space<vmem>>, vector<8x128xf32>,
    return
  }
  func.func @transform_0(%arg0: i32) -> (i32, i32, i32) {
    %c0_i32 = arith.constant 0 : i32
    %c0_i32_0 = arith.constant 0 : i32
    %c0_i32_1 = arith.constant 0 : i32
    return %arg0, %c0_i32, %c0_i32_0 : i32, i32, i32
  }
  func.func @transform_1(%arg0: i32) -> (i32, i32) {
    %c0_i32 = arith.constant 0 : i32
    %c0_i32_0 = arith.constant 0 : i32
    %c0_i32_1 = arith.constant 0 : i32
    return %c0_i32, %c0_i32_0 : i32, i32
  }
  func.func @transform_2(%arg0: i32) -> (i32, i32) {
    %c0_i32 = arith.constant 0 : i32
    %c0_i32_0 = arith.constant 0 : i32
    %c0_i32_1 = arith.constant 0 : i32
    return %c0_i32, %c0_i32_0 : i32, i32
  }
  func.func @transform_3(%arg0: i32) -> (i32, i32) {
    %c0_i32 = arith.constant 0 : i32
    %c0_i32_0 = arith.constant 0 : i32
    return %arg0, %c0_i32 : i32, i32
  }
}

</mosaic_0001>

<bundles_post_ra>
// kernel: tpu_custom_call.1
= control target key start
LH: loop header
LB: loop body
LE: loop exit
PB: predicated region body
PF: predicated region fallthrough
CT: control target
= control target key end

     0   :  { %8 = vsyncpa [#allocation3], 0  ;;  %s1140_s0 = inlined_call_operand.hbm [shape: bf16[8,56,128], index: 0, kind: input, shape index: {}]   ;;  %s1141_s1 = inlined_call_operand.hbm [shape: f32[56,128], index: 1, kind: input, shape index: {}]   ;;  %s1142_s2 = inlined_call_operand.hbm [shape: bf16[128,128], index: 2, kind: input, shape index: {}]   ;;  %s1143_s3 = inlined_call_operand.hbm [shape: f32[8,128], index: 3, kind: output, shape index: {}]  }
   0x1   :  { %9 = vsyncpa [#allocation6], 0  ;;  %s28_s14 = sshll.u32 %s1141_s1, 4  ;;  %s29_s14 = int_to_ptr.hbm [resolvable:$true] %s28_s14 }
   0x2   :  { %10 = vsyncpa [#allocation4], 0  ;;  %s758_s15 = smov [#allocation5]   ;;  %s15_s19 = sshll.u32 %s1140_s0, 4  ;;  %s16_s19 = int_to_ptr.hbm [resolvable:$true] %s15_s19 }
   0x3   :  { %s30_s16 = sshll.u32 %s758_s15, 4  ;;  %s759_s20 = smov 128   ;;  %s31_s16 = int_to_ptr.vmem [resolvable:$true] %s30_s16 }
   0x4   :  { %s760_s21 = smov 8   ;;  %s761_s22 = smov [#allocation2]  }
   0x5   :  { %36 = dma.hbm_to_vmem [thread:$0]  %s29_s14, 896, %s31_s16, [#allocation6], %s759_s20, %s759_s20, %s760_s21  }
   0x6   :  { %s17_s23 = sshll.u32 %s761_s22, 4  ;;  %s762_s24 = smov 64   ;;  %s18_s23 = int_to_ptr.vmem [resolvable:$true] %s17_s23 }
   0x7   :  { %s763_s25 = smov 4   ;;  %s41_s27 = sshll.u32 %s1142_s2, 4  ;;  %s42_s27 = int_to_ptr.hbm [resolvable:$true] %s41_s27 }
   0x8   :  { %23 = dma.hbm_to_vmem [thread:$0]  %s16_s19, 3584, %s18_s23, [#allocation3], %s762_s24, %s762_s24, %s763_s25  }
   0x9   :  { %s764_s28 = smov [#allocation7]  }
   0xa   :  { %s43_s29 = sshll.u32 %s764_s28, 4  ;;  %s44_s29 = int_to_ptr.vmem [resolvable:$true] %s43_s29 }
   0xb   :  { %49 = dma.hbm_to_vmem [thread:$0]  %s42_s27, 1024, %s44_s29, [#allocation6], %s762_s24, %s762_s24, %s763_s25  }
   0xc   :  { %752 = dma.done.wait [#allocation3], 3584  }
   0xd   :  { %753 = vsyncadd [#allocation3], 4294963712 }
   0xe   :  { %754 = dma.done.wait [#allocation6], 1920  }
   0xf   :  { %755 = vsyncadd [#allocation6], 4294965376  ;;  %v508_v0 = vld [vmem:[#allocation7 + $0x38] sm:$0xff]  ;;  %v507_v1 = vld [vmem:[#allocation7 + $0x30] sm:$0xff]  ;;  %vm373_vm0 = vcmask 1041409   ;;  %vm375_vm1 = vcmask 1042434  }
  0x10   :  { %437 = vmatpush.bf16.msra.mxu0 %v508_v0  ;;  %v795_v2 = vld [vmem:[#allocation2] sm:$0xff]   ;;  %v799_v5 = vld [vmem:[#allocation2 + $0x8] sm:$0xff]   ;;  %v801_v6 = vld [vmem:[#allocation2 + $0x10] sm:$0xff]   ;;  %vm377_vm2 = vcmask 1043459   ;;  %vm379_vm3 = vcmask 1044484   ;;  %vm381_vm4 = vcmask 1045509  }
  0x11   :  { %v511_v3 = vunpack.c.l.bf16 %v795_v2  ;;  %v512_v4 = vunpack.c.h.bf16 %v795_v2  ;;  %v803_v7 = vld [vmem:[#allocation2 + $0x18] sm:$0xff]   ;;  %v506_v8 = vld [vmem:[#allocation7 + $0x28] sm:$0xff]  ;;  %v515_v9 = vunpack.c.l.bf16 %v799_v5  ;;  %v516_v10 = vunpack.c.h.bf16 %v799_v5  ;;  %v811_v14 = vld [vmem:[#allocation2 + $0x28] sm:$0xff]   ;;  %s765_s0 = smov [#allocation8]   ;;  %s458_s5 = sshll.u32 %s1143_s3, 4  ;;  %s459_s5 = int_to_ptr.hbm [resolvable:$true] %s458_s5 }
  0x12   :  { %v519_v11 = vunpack.c.l.bf16 %v801_v6  ;;  %v520_v12 = vunpack.c.h.bf16 %v801_v6  ;;  %v809_v13 = vld [vmem:[#allocation2 + $0x20] sm:$0xff]   ;;  %v813_v15 = vld [vmem:[#allocation2 + $0x30] sm:$0xff]   ;;  %v523_v16 = vunpack.c.l.bf16 %v803_v7  ;;  %v524_v17 = vunpack.c.h.bf16 %v803_v7  ;;  %v819_v20 = vld [vmem:[#allocation2 + $0x38] sm:$0xff]   ;;  %s456_s2 = sshll.u32 %s765_s0, 4  ;;  %s457_s2 = int_to_ptr.vmem [resolvable:$true] %s456_s2 }
  0x13   :  { %v527_v18 = vunpack.c.l.bf16 %v809_v13  ;;  %v528_v19 = vunpack.c.h.bf16 %v809_v13  ;;  %v821_v21 = vld [vmem:[#allocation2 + $0x40] sm:$0xff]   ;;  %v823_v22 = vld [vmem:[#allocation2 + $0x48] sm:$0xff]   ;;  %v531_v23 = vunpack.c.l.bf16 %v811_v14  ;;  %v532_v24 = vunpack.c.h.bf16 %v811_v14  ;;  %v829_v27 = vld [vmem:[#allocation2 + $0x50] sm:$0xff]  }
  0x14   :  { %438 = vmatpush.bf16.msra.mxu0 %v507_v1  ;;  %v535_v25 = vunpack.c.l.bf16 %v813_v15  ;;  %v536_v26 = vunpack.c.h.bf16 %v813_v15  ;;  %v831_v28 = vld [vmem:[#allocation2 + $0x58] sm:$0xff]   ;;  %v833_v29 = vld [vmem:[#allocation2 + $0x60] sm:$0xff]   ;;  %v539_v30 = vunpack.c.l.bf16 %v819_v20  ;;  %v540_v31 = vunpack.c.h.bf16 %v819_v20  ;;  %v839_v34 = vld [vmem:[#allocation2 + $0x68] sm:$0xff]  }
  0x15   :  { %v543_v32 = vunpack.c.l.bf16 %v821_v21  ;;  %v544_v33 = vunpack.c.h.bf16 %v821_v21  ;;  %v841_v35 = vld [vmem:[#allocation2 + $0x70] sm:$0xff]   ;;  %v547_v36 = vunpack.c.l.bf16 %v823_v22  ;;  %v548_v37 = vunpack.c.h.bf16 %v823_v22  ;;  %v847_v40 = vld [vmem:[#allocation2 + $0x78] sm:$0xff]   ;;  %v849_v41 = vld [vmem:[#allocation2 + $0x80] sm:$0xff]  }
  0x16   :  { %v551_v38 = vunpack.c.l.bf16 %v829_v27  ;;  %v855_v46 = vld [vmem:[#allocation2 + $0x88] sm:$0xff]   ;;  %v857_v47 = vld [vmem:[#allocation2 + $0x90] sm:$0xff]   ;;  %v505_v48 = vld [vmem:[#allocation7 + $0x20] sm:$0xff]  ;;  %v1151_v21 = vunpack.c.h.bf16 %v829_v27  ;;  %v1154_v22 = vunpack.c.l.bf16 %v833_v29  ;;  %v1156_v27 = vunpack.c.l.bf16 %v839_v34 }
  0x17   :  { %v863_v53 = vld [vmem:[#allocation2 + $0x98] sm:$0xff]   ;;  %v865_v54 = vld [vmem:[#allocation2 + $0xa0] sm:$0xff]   ;;  %v871_v59 = vld [vmem:[#allocation2 + $0xa8] sm:$0xff]   ;;  %vm383_vm5 = vcmask 1046534   ;;  %vm385_vm6 = vcmask 1047559  }
  0x18   :  { %439 = vmatpush.bf16.msra.mxu0 %v506_v8  ;;  %v873_v60 = vld [vmem:[#allocation2 + $0xb0] sm:$0xff]   ;;  %v879_v8 = vld [vmem:[#allocation2 + $0xb8] sm:$0xff]   ;;  %v881_v56 = vld [vmem:[#allocation2 + $0xc0] sm:$0xff]  }
  0x19   :  { %v504_v61 = vld [vmem:[#allocation7 + $0x18] sm:$0xff]  ;;  %v887_v51 = vld [vmem:[#allocation2 + $0xc8] sm:$0xff]   ;;  %v891_v63 = vld [vmem:[#allocation2 + $0xd8] sm:$0xff]  }
  0x1a   :  { %v889_v62 = vld [vmem:[#allocation2 + $0xd0] sm:$0xff]   ;;  %v897_v58 = vld [vmem:[#allocation5] sm:$0xff]  ;;  %v899_v55 = vld [vmem:[#allocation5 + $0x8] sm:$0xff] }
  0x1b   :  { %v901_v52 = vld [vmem:[#allocation5 + $0x10] sm:$0xff]  ;;  %v907_v44 = vld [vmem:[#allocation5 + $0x18] sm:$0xff]  ;;  %v909_v0 = vld [vmem:[#allocation5 + $0x20] sm:$0xff]  ;;  %v924_v45 = vmul.f32 %v511_v3, %v897_v58  ;;  %v182_v57 = vmul.f32 %v512_v4, %v899_v55  ;;  %v188_v5 = vmul.f32 %v524_v17, %v897_v58  ;;  %v195_v13 = vmul.f32 %v539_v30, %v897_v58 }
  0x1c   :  { %440 = vmatpush.bf16.msra.mxu0 %v505_v48  ;;  %v911_v50 = vld [vmem:[#allocation5 + $0x28] sm:$0xff]  ;;  %v917_v39 = vld [vmem:[#allocation5 + $0x30] sm:$0xff]  ;;  %v932_v49 = vmul.f32 %v515_v9, %v901_v52  ;;  %v937_v1 = vmul.f32 %v516_v10, %v907_v44  ;;  %v942_v3 = vmul.f32 %v519_v11, %v909_v0  ;;  %v189_v9 = vmul.f32 %v527_v18, %v899_v55  ;;  %v502_v15 = vld [vmem:[#allocation7 + $0x8] sm:$0xff] }
  0x1d   :  { %v503_v43 = vld [vmem:[#allocation7 + $0x10] sm:$0xff]  ;;  %v947_v2 = vmul.f32 %v520_v12, %v911_v50  ;;  %v952_v4 = vmul.f32 %v523_v16, %v917_v39  ;;  %v190_v10 = vmul.f32 %v528_v19, %v901_v52  ;;  %v966_v6 = vmul.f32 %v531_v23, %v907_v44 }
  0x1e   :  { %v971_v11 = vmul.f32 %v532_v24, %v909_v0  ;;  %v976_v7 = vmul.f32 %v535_v25, %v911_v50  ;;  %v981_v12 = vmul.f32 %v536_v26, %v917_v39  ;;  %v196_v14 = vmul.f32 %v540_v31, %v899_v55 }
  0x1f   :  { %1144 = vst [vmem:[#allocation12_spill] sm:$0xff] %v947_v2  ;;  %v197_v16 = vmul.f32 %v543_v32, %v901_v52  ;;  %v198_v17 = vmul.f32 %v544_v33, %v907_v44  ;;  %v998_v18 = vmul.f32 %v547_v36, %v909_v0  ;;  %v1003_v19 = vmul.f32 %v548_v37, %v911_v50 }
  0x20   :  { %441 = vmatpush.bf16.msra.mxu0 %v504_v61  ;;  %1145 = vst [vmem:[#allocation13_spill] sm:$0xff] %v952_v4  ;;  %v1008_v20 = vmul.f32 %v551_v38, %v917_v39  ;;  %v202_v23 = vmul.f32 %v1151_v21, %v897_v58  ;;  %v1152_v24 = vunpack.c.l.bf16 %v831_v28  ;;  %v1153_v26 = vunpack.c.h.bf16 %v831_v28 }
  0x21   :  { %1146 = vst [vmem:[#allocation14_spill] sm:$0xff] %v976_v7  ;;  %v205_v31 = vmul.f32 %v1154_v22, %v907_v44  ;;  %v1155_v32 = vunpack.c.h.bf16 %v833_v29  ;;  %v1028_v36 = vmul.f32 %v1156_v27, %v911_v50  ;;  %v1158_v37 = vunpack.c.h.bf16 %v839_v34 }
  0x22   :  { %1147 = vst [vmem:[#allocation15_spill] sm:$0xff] %v981_v12  ;;  %v203_v25 = vmul.f32 %v1152_v24, %v899_v55  ;;  %v204_v30 = vmul.f32 %v1153_v26, %v901_v52  ;;  %v1160_v28 = vunpack.c.l.bf16 %v841_v35  ;;  %v1161_v61 = vunpack.c.h.bf16 %v841_v35 }
  0x23   :  { %1148 = vst [vmem:[#allocation16_spill] sm:$0xff] %v998_v18  ;;  %v206_v33 = vmul.f32 %v1155_v32, %v909_v0  ;;  %v1033_v38 = vmul.f32 %v1158_v37, %v917_v39  ;;  %v1162_v29 = vunpack.c.l.bf16 %v847_v40  ;;  %v1163_v26 = vunpack.c.h.bf16 %v847_v40 }
  0x24   :  { %442 = vmatpush.bf16.msra.mxu0 %v503_v43  ;;  %1149 = vst [vmem:[#allocation17_spill] sm:$0xff] %v1003_v19  ;;  %v209_v43 = vmul.f32 %v1160_v28, %v897_v58  ;;  %v210_v21 = vmul.f32 %v1161_v61, %v899_v55  ;;  %v1164_v34 = vunpack.c.l.bf16 %v849_v41  ;;  %v1165_v27 = vunpack.c.h.bf16 %v849_v41  ;;  %v501_v28 = vld [vmem:[#allocation7] sm:$0xff] }
  0x25   :  { %1150 = vst [vmem:[#allocation18_spill] sm:$0xff] %v1008_v20  ;;  %v211_v24 = vmul.f32 %v1162_v29, %v901_v52  ;;  %v212_v22 = vmul.f32 %v1163_v26, %v907_v44  ;;  %v1166_v35 = vunpack.c.l.bf16 %v855_v46  ;;  %v1168_v29 = vunpack.c.h.bf16 %v855_v46 }
  0x26   :  { %1157 = vst [vmem:[#allocation19_spill] sm:$0xff] %v1028_v36  ;;  %v213_v32 = vmul.f32 %v1164_v34, %v909_v0  ;;  %v214_v37 = vmul.f32 %v1165_v27, %v911_v50  ;;  %v1169_v26 = vunpack.c.l.bf16 %v857_v47  ;;  %v1170_v34 = vunpack.c.h.bf16 %v857_v47 }
  0x27   :  { %1159 = vst [vmem:[#allocation20_spill] sm:$0xff] %v1033_v38  ;;  %v1056_v61 = vmul.f32 %v1166_v35, %v917_v39  ;;  %v216_v40 = vmul.f32 %v1168_v29, %v897_v58  ;;  %v1172_v35 = vunpack.c.h.bf16 %v863_v53  ;;  %v1173_v46 = vunpack.c.l.bf16 %v865_v54 }
  0x28   :  { %443 = vmatpush.bf16.msra.mxu0 %v502_v15  ;;  %v217_v48 = vmul.f32 %v1169_v26, %v899_v55  ;;  %v218_v41 = vmul.f32 %v1170_v34, %v901_v52  ;;  %v1171_v15 = vunpack.c.l.bf16 %v863_v53  ;;  %v1175_v47 = vunpack.c.l.bf16 %v871_v59 }
  0x29   :  { %1167 = vst [vmem:[#allocation21_spill] sm:$0xff] %v1056_v61  ;;  %v220_v42 = vmul.f32 %v1172_v35, %v909_v0  ;;  %v221_v29 = vmul.f32 %v1173_v46, %v911_v50  ;;  %v1174_v61 = vunpack.c.h.bf16 %v865_v54  ;;  %v1176_v38 = vunpack.c.h.bf16 %v871_v59 }
  0x2a   :  { %v219_v27 = vmul.f32 %v1171_v15, %v907_v44  ;;  %v223_v34 = vmul.f32 %v1175_v47, %v897_v58  ;;  %v1177_v53 = vunpack.c.l.bf16 %v873_v60  ;;  %v1178_v20 = vunpack.c.h.bf16 %v873_v60 }
  0x2b   :  { %v222_v26 = vmul.f32 %v1174_v61, %v917_v39  ;;  %v224_v15 = vmul.f32 %v1176_v38, %v899_v55  ;;  %v1179_v54 = vunpack.c.l.bf16 %v879_v8  ;;  %v1180_v12 = vunpack.c.h.bf16 %v879_v8 }
  0x2c   :  { %v225_v35 = vmul.f32 %v1177_v53, %v901_v52  ;;  %v226_v46 = vmul.f32 %v1178_v20, %v907_v44  ;;  %v1181_v59 = vunpack.c.l.bf16 %v881_v56  ;;  %v1182_v4 = vunpack.c.h.bf16 %v881_v56  ;;  %444 = vmatpush.bf16.msra.mxu0 %v501_v28 }
  0x2d   :  { %v227_v61 = vmul.f32 %v1179_v54, %v909_v0  ;;  %v228_v47 = vmul.f32 %v1180_v12, %v911_v50  ;;  %v1183_v60 = vunpack.c.l.bf16 %v887_v51  ;;  %v1184_v54 = vunpack.c.h.bf16 %v887_v51 }
  0x2e   :  { %v229_v38 = vmul.f32 %v1181_v59, %v917_v39  ;;  %v230_v53 = vmul.f32 %v1182_v4, %v897_v58  ;;  %v1185_v8 = vunpack.c.l.bf16 %v889_v62  ;;  %v1186_v59 = vunpack.c.h.bf16 %v889_v62 }
  0x2f   :  { %v231_v20 = vmul.f32 %v1183_v60, %v899_v55  ;;  %v232_v36 = vmul.f32 %v1184_v54, %v901_v52  ;;  %v1187_v56 = vunpack.c.l.bf16 %v891_v63  ;;  %v1188_v4 = vunpack.c.h.bf16 %v891_v63 }
  0x30   :  { %v233_v12 = vmul.f32 %v1185_v8, %v907_v44  ;;  %v234_v19 = vmul.f32 %v1186_v59, %v909_v0  ;;  %v237_v28 = vadd.f32 %v182_v57, %v924_v45  ;;  %v249_v51 = vadd.f32 %v189_v9, %v188_v5 }
  0x31   :  { %v235_v58 = vmul.f32 %v1187_v56, %v911_v50  ;;  %v236_v55 = vmul.f32 %v1188_v4, %v917_v39  ;;  %v261_v52 = vadd.f32 %v196_v14, %v195_v13  ;;  %v273_v60 = vadd.f32 %v203_v25, %v202_v23 }
  0x32   :  { %v285_v54 = vadd.f32 %v210_v21, %v209_v43  ;;  %v297_v7 = vadd.f32 %v217_v48, %v216_v40  ;;  %v238_v44 = vadd.f32 %v237_v28, %v932_v49  ;;  %v250_v8 = vadd.f32 %v249_v51, %v190_v10 }
  0x33   :  { %v309_v62 = vadd.f32 %v224_v15, %v223_v34  ;;  %v321_v0 = vadd.f32 %v231_v20, %v230_v53  ;;  %v262_v59 = vadd.f32 %v261_v52, %v197_v16  ;;  %v274_v2 = vadd.f32 %v273_v60, %v204_v30  ;;  %v1189_v16 = vld [vmem:[#allocation16_spill] sm:$0xff] }
  0x34   :  { %v286_v18 = vadd.f32 %v285_v54, %v211_v24  ;;  %v298_v50 = vadd.f32 %v297_v7, %v218_v41  ;;  %v239_v56 = vadd.f32 %v238_v44, %v937_v1  ;;  %v251_v39 = vadd.f32 %v250_v8, %v966_v6  ;;  %v1190_v1 = vld [vmem:[#allocation12_spill] sm:$0xff]  ;;  %v1191_v6 = vld [vmem:[#allocation14_spill] sm:$0xff]  ;;  %v1195_v41 = vld [vmem:[#allocation15_spill] sm:$0xff] }
  0x35   :  { %v310_v63 = vadd.f32 %v309_v62, %v225_v35  ;;  %v322_v45 = vadd.f32 %v321_v0, %v232_v36  ;;  %v263_v57 = vadd.f32 %v262_v59, %v198_v17  ;;  %v275_v5 = vadd.f32 %v274_v2, %v205_v31  ;;  %v1192_v2 = vld [vmem:[#allocation17_spill] sm:$0xff]  ;;  %v1193_v31 = vld [vmem:[#allocation19_spill] sm:$0xff]  ;;  %v1197_v15 = vld [vmem:[#allocation20_spill] sm:$0xff] }
  0x36   :  { %v287_v9 = vadd.f32 %v286_v18, %v212_v22  ;;  %v299_v13 = vadd.f32 %v298_v50, %v219_v27  ;;  %v240_v48 = vadd.f32 %v239_v56, %v942_v3  ;;  %v252_v49 = vadd.f32 %v251_v39, %v971_v11  ;;  %v1194_v11 = vld [vmem:[#allocation13_spill] sm:$0xff] }
  0x37   :  { %v311_v10 = vadd.f32 %v310_v63, %v226_v46  ;;  %v323_v14 = vadd.f32 %v322_v45, %v233_v12  ;;  %v264_v23 = vadd.f32 %v263_v57, %v1189_v16  ;;  %v276_v25 = vadd.f32 %v275_v5, %v206_v33  ;;  %v1198_v46 = vld [vmem:[#allocation21_spill] sm:$0xff] }
  0x38   :  { %v288_v7 = vadd.f32 %v287_v9, %v213_v32  ;;  %v300_v30 = vadd.f32 %v299_v13, %v220_v42  ;;  %v241_v43 = vadd.f32 %v240_v48, %v1190_v1  ;;  %v253_v21 = vadd.f32 %v252_v49, %v1191_v6  ;;  %v1196_v32 = vld [vmem:[#allocation18_spill] sm:$0xff] }
  0x39   :  { %v312_v36 = vadd.f32 %v311_v10, %v227_v61  ;;  %v324_v17 = vadd.f32 %v323_v14, %v234_v19  ;;  %v265_v18 = vadd.f32 %v264_v23, %v1192_v2  ;;  %v277_v24 = vadd.f32 %v276_v25, %v1193_v31 }
  0x3a   :  { %v289_v3 = vadd.f32 %v288_v7, %v214_v37  ;;  %v301_v22 = vadd.f32 %v300_v30, %v221_v29  ;;  %v242_v40 = vadd.f32 %v241_v43, %v1194_v11  ;;  %v254_v27 = vadd.f32 %v253_v21, %v1195_v41 }
  0x3b   :  { %v313_v34 = vadd.f32 %v312_v36, %v228_v47  ;;  %v325_v33 = vadd.f32 %v324_v17, %v235_v58  ;;  %v266_v42 = vadd.f32 %v265_v18, %v1196_v32  ;;  %v278_v35 = vadd.f32 %v277_v24, %v1197_v15 }
  0x3c   :  { %v290_v53 = vadd.f32 %v289_v3, %v1198_v46  ;;  %v302_v61 = vadd.f32 %v301_v22, %v222_v26  ;;  %v243_v19 = vrot.slane %v242_v40, 4  ;;  %v255_v20 = vrot.slane %v254_v27, 4 }
  0x3d   :  { %v314_v12 = vadd.f32 %v313_v34, %v229_v38  ;;  %v326_v4 = vadd.f32 %v325_v33, %v236_v55  ;;  %v267_v28 = vrot.slane %v266_v42, 4  ;;  %v279_v37 = vrot.slane %v278_v35, 4 }
  0x3e   :  { %v291_v29 = vrot.slane %v290_v53, 4  ;;  %v303_v51 = vrot.slane %v302_v61, 4  ;;  %v244_v52 = vadd.f32 %v243_v19, %v242_v40  ;;  %v256_v60 = vadd.f32 %v255_v20, %v254_v27 }
  0x3f   :  { %v315_v54 = vrot.slane %v314_v12, 4  ;;  %v327_v47 = vrot.slane %v326_v4, 4  ;;  %v268_v58 = vadd.f32 %v267_v28, %v266_v42  ;;  %v280_v44 = vadd.f32 %v279_v37, %v278_v35 }
  0x40   :  { %v292_v8 = vadd.f32 %v291_v29, %v290_v53  ;;  %v304_v62 = vadd.f32 %v303_v51, %v302_v61  ;;  %v245_v0 = vrot.slane %v244_v52, 2  ;;  %v257_v59 = vrot.slane %v256_v60, 2 }
  0x41   :  { %v316_v50 = vadd.f32 %v315_v54, %v314_v12  ;;  %v328_v26 = vadd.f32 %v327_v47, %v326_v4  ;;  %v269_v56 = vrot.slane %v268_v58, 2  ;;  %v281_v39 = vrot.slane %v280_v44, 2 }
  0x42   :  { %v293_v38 = vrot.slane %v292_v8, 2  ;;  %v305_v55 = vrot.slane %v304_v62, 2  ;;  %v246_v63 = vadd.f32 %v245_v0, %v244_v52  ;;  %v258_v45 = vadd.f32 %v257_v59, %v256_v60 }
  0x43   :  { %v317_v57 = vrot.slane %v316_v50, 2  ;;  %v329_v5 = vrot.slane %v328_v26, 2  ;;  %v270_v9 = vadd.f32 %v269_v56, %v268_v58  ;;  %v282_v13 = vadd.f32 %v281_v39, %v280_v44 }
  0x44   :  { %v294_v48 = vadd.f32 %v293_v38, %v292_v8  ;;  %v306_v49 = vadd.f32 %v305_v55, %v304_v62  ;;  %v247_v10 = vrot.slane %v246_v63, 1  ;;  %v259_v14 = vrot.slane %v258_v45, 1 }
  0x45   :  { %v318_v16 = vadd.f32 %v317_v57, %v316_v50  ;;  %v330_v23 = vadd.f32 %v329_v5, %v328_v26  ;;  %v271_v25 = vrot.slane %v270_v9, 1  ;;  %v283_v7 = vrot.slane %v282_v13, 1 }
  0x46   :  { %v295_v30 = vrot.slane %v294_v48, 1  ;;  %v307_v1 = vrot.slane %v306_v49, 1  ;;  %v248_v43 = vadd.f32 %v247_v10, %v246_v63  ;;  %v260_v6 = vadd.f32 %v259_v14, %v258_v45 }
  0x47   :  { %v319_v21 = vrot.slane %v318_v16, 1  ;;  %v331_v36 = vrot.slane %v330_v23, 1  ;;  %v272_v17 = vadd.f32 %v271_v25, %v270_v9  ;;  %v284_v2 = vadd.f32 %v283_v7, %v282_v13 }
  0x48   :  { %v296_v18 = vadd.f32 %v295_v30, %v294_v48  ;;  %v308_v31 = vadd.f32 %v307_v1, %v306_v49  ;;  %v333_v22 = vpack.c.bf16 %v248_v43, %v248_v43  ;;  %v334_v11 = vpack.c.bf16 %v260_v6, %v260_v6 }
  0x49   :  { %v320_v24 = vadd.f32 %v319_v21, %v318_v16  ;;  %v332_v3 = vadd.f32 %v331_v36, %v330_v23  ;;  %v335_v40 = vpack.c.bf16 %v272_v17, %v272_v17  ;;  %v336_v41 = vpack.c.bf16 %v284_v2, %v284_v2 }
  0x4a   :  { %v337_v27 = vpack.c.bf16 %v296_v18, %v296_v18  ;;  %v338_v34 = vpack.c.bf16 %v308_v31, %v308_v31  ;;  %v365_v32 = vunpack.c.l.b16 %v333_v22  ;;  %v366_v42 = vunpack.c.l.b16 %v334_v11 }
  0x4b   :  { %v339_v33 = vpack.c.bf16 %v320_v24, %v320_v24  ;;  %v340_v15 = vpack.c.bf16 %v332_v3, %v332_v3  ;;  %v367_v35 = vunpack.c.l.b16 %v335_v40  ;;  %v368_v46 = vunpack.c.l.b16 %v336_v41 }
  0x4c   :  { %v369_v53 = vunpack.c.l.b16 %v337_v27  ;;  %v370_v61 = vunpack.c.l.b16 %v338_v34  ;;  %v374_v19 = vsel %vm373_vm0, %v366_v42, %v365_v32 }
  0x4d   :  { %v371_v20 = vunpack.c.l.b16 %v339_v33  ;;  %v376_v12 = vsel %vm375_vm1, %v367_v35, %v374_v19  ;;  %v372_v4 = vunpack.c.l.b16 %v340_v15 }
  0x4e   :  { %v378_v28 = vsel %vm377_vm2, %v368_v46, %v376_v12 }
  0x4f   :  { %v380_v37 = vsel %vm379_vm3, %v369_v53, %v378_v28 }
  0x50   :  { %v382_v29 = vsel %vm381_vm4, %v370_v61, %v380_v37 }
  0x51   :  { %v384_v51 = vsel %vm383_vm5, %v371_v20, %v382_v29 }
  0x52   :  { %v386_v52 = vsel %vm385_vm6, %v372_v4, %v384_v51 }
  0x53   :  { %v387_v60 = vpack.c.b16 %v386_v52, %v386_v52 }
  0x55   :  { %445 = vmatmul.bf16.vlgmr.msra.gmra.mxu0 %v387_v60 }
  0xd2   :  { %v446_v54 = vpop.f32.mrf.mxu0 }
  0xd3   :  { %450 = vst [vmem:[#allocation8] sm:$0xff] %v446_v54 }
  0xd4   :  { %461 = dma.vmem_to_hbm [thread:$0]  %s457_s2, 128, %s459_s5, [#allocation4]  }
  0xda   :  { %v448_v47 = vpop.f32.mrf.mxu0 }
  0xdb   :  { %756 = dma.done.wait [#allocation4], 128  }
  0xdc   :  { %757 = vsyncadd [#allocation4], 4294967168 }
  0xdd   :  { %466 = vsyncpa [#allocation3], 1 }
  0xde   :  { %467 = vsyncpa [#allocation6], 1 }
  0xdf   :  { %468 = vsyncpa [#allocation4], 1 }

</bundles_post_ra>
